<compile_context>
chip_gen: v7x
topology: tpu7x:2x2x1
jax: 0.10.0
libtpu: 0.0.40
codegen_flags: <defaults>
</compile_context>

<pallas_src>
import math
from functools import partial

import jax
import jax.numpy as jnp
from jax.experimental import pallas as pl
from jax.experimental.pallas import tpu as pltpu


def _round_up(v, m):
    return ((v + m - 1) // m) * m


# --------------------- circuit factors (XLA-side, O(D^2)) ------------------- #

def _ry_layer(thetas, n):
    """kron(RY(theta_{n-1}), ..., RY(theta_0)); qubit i <-> bit i of the basis
    index, matching `temp_mat = kron(mm_i, temp_mat)` in VClassicCircuitMatrix."""
    M = jnp.ones((1, 1), dtype=jnp.float32)
    for i in range(n):
        c = jnp.cos(thetas[i] / 2.0)
        s = jnp.sin(thetas[i] / 2.0)
        mm = jnp.stack([jnp.stack([c, -s]), jnp.stack([s, c])]).astype(jnp.float32)
        M = jnp.kron(mm, M)
    return M


def _cz_ring_diag(n):
    """Diagonal of the vqc_10 entangling block:
    CZ(n-2,n-1), CZ(n-3,n-2), ..., CZ(0,1), CZ(0,n-1). Every CZ (including the
    swap-decomposed qf_cz(0, n-1)) is diagonal: element k picks up -1 whenever
    both participating qubit bits of k are 1."""
    D = 2 ** n
    idx = jnp.arange(D)
    diag = jnp.ones((D,), dtype=jnp.float32)
    pairs = [(n - 2 - i, n - 1 - i) for i in range(n - 1)] + [(0, n - 1)]
    for a, b in pairs:
        both = ((idx >> a) & 1) * ((idx >> b) & 1)
        diag = diag * jnp.where(both == 1, -1.0, 1.0).astype(jnp.float32)
    return diag


def build_vqc10_matrix(theta, n):
    """Dense U = R2 @ diag(cz) @ R1 -- reference only; the kernel path never
    materializes this matrix nor pays the O(D^3) product.
    Note: PyTorch builds this in cdouble; we build in float32 (drift only
    matters at much larger qubit counts)."""
    R1 = _ry_layer(theta[0:n], n)
    R2 = _ry_layer(theta[n:2 * n], n)
    d = _cz_ring_diag(n)
    return R2 @ (d[:, None] * R1)


# ------------------------------ Pallas kernel ------------------------------ #

def _vqc_fwd_kernel(x_ref, w1_ref, w2_ref, o_ref):
    # out = (x @ W1) @ W2, two canonical (M,K)x(K,N) MXU passes.
    # W1 already has the CZ diagonal folded in; both weights are pre-transposed
    # in the wrapper so no in-kernel transpose / layout shuffle is needed.
    y = jnp.dot(x_ref[...], w1_ref[...], preferred_element_type=jnp.float32)
    o_ref[...] = jnp.dot(y.astype(w2_ref.dtype), w2_ref[...],
                         preferred_element_type=jnp.float32)


@partial(jax.jit, static_argnames=("output_num", "force_pallas"))
def vqc_net_forward(x, theta, output_num, force_pallas=None):
    """Equivalent of VQC_Net.forward for vqc_name='vqc_10'.

    x: (B, input_num) real; theta: (2*n,) real (the PyTorch cdouble parameter
    has zero imaginary part, so the forward is entirely real arithmetic).
    """
    B, D = x.shape
    n = int(math.log2(D))
    assert 2 ** n == D, "input_num must be a power of two"
    assert output_num <= D
    # TODO(synk): amp2prop (taken when output_num <= num_qubit) is not defined
    # in the provided source; only the output_num > num_qubit path is implemented.
    assert output_num > n

    # ---- factored circuit build (O(D^2), fused into this jit) ----
    R1 = _ry_layer(theta[0:n], n)           # (D, D)
    R2 = _ry_layer(theta[n:2 * n], n)       # (D, D)
    d = _cz_ring_diag(n)                    # (D,)

    P = max(128, _round_up(output_num, 128))
    W1 = R1.T * d[None, :]                  # (D, D) == (diag @ R1)^T
    R2_rows = R2[:P, :] if P <= D else jnp.pad(R2, ((0, P - D), (0, 0)))
    W2 = R2_rows.T                          # (D, P), lane dim P (mult of 128)

    # bf16 operands only pay off once D is MXU-relevant; keep f32 accumulation.
    compute_dtype = jnp.bfloat16 if D >= 1024 else jnp.float32
    xb = 2 if compute_dtype == jnp.bfloat16 else 4
    x = x.astype(compute_dtype)
    W1 = W1.astype(compute_dtype)
    W2 = W2.astype(compute_dtype)

    # ---- size gate: tiny problems are a single sub-microsecond MXU pass; the
    # pallas_call launch/DMA setup would dominate, so let XLA fuse them. ----
    if force_pallas is None:
        use_pallas = (B >= 256) or (D >= 256)
    else:
        use_pallas = force_pallas

    weight_bytes = (D * D + D * P) * xb
    single_buffer_w = weight_bytes > (2 << 20)   # grid-invariant -> 1 buffer
    w_buffers = 1 if single_buffer_w else 2

    # Batch tiling: >=2 grid steps for moderate/large B so the "parallel" axis
    # actually feeds both v7x TensorCores; 256-row M tiles are MXU-native on
    # v6e/v7x and fine (2 passes) on v5e's 128x128 arrays.
    if B > 256:
        TB = 256 if B >= 512 else _round_up(pl.cdiv(B, 2), 8)
    else:
        TB = B

    def vmem_est(tb):
        return (2 * tb * D * xb) + w_buffers * weight_bytes + (2 * tb * P * 4)

    VMEM_BUDGET = 40 * 1024 * 1024   # conservative for v7x's 64 MiB VMEM
    while vmem_est(TB) > VMEM_BUDGET and TB > 8:
        TB = max(8, _round_up(TB // 2, 8))

    if vmem_est(TB) > VMEM_BUDGET:
        # TODO(synk): for very large D add a K (contraction) grid axis with an
        # f32 VMEM accumulator instead of falling back to XLA.
        use_pallas = False

    if not use_pallas:
        y = jnp.dot(x, W1, preferred_element_type=jnp.float32)
        out = jnp.dot(y.astype(compute_dtype), W2,
                      preferred_element_type=jnp.float32)
        return out[:, :output_num]

    grid = (pl.cdiv(B, TB),)

    def w_spec(shape):
        if single_buffer_w:
            return pl.BlockSpec(shape, lambda i: (0, 0),
                                pipeline_mode=pl.Buffered(1))
        return pl.BlockSpec(shape, lambda i: (0, 0))

    est = vmem_est(TB)
    vmem_limit = None
    if est > 30 * 1024 * 1024:   # raise the scoped default only when needed
        vmem_limit = min(60 * 1024 * 1024, (est * 3) // 2)

    out = pl.pallas_call(
        _vqc_fwd_kernel,
        out_shape=jax.ShapeDtypeStruct((B, P), jnp.float32),
        grid=grid,
        in_specs=[
            pl.BlockSpec((TB, D), lambda i: (i, 0)),
            w_spec((D, D)),
            w_spec((D, P)),
        ],
        out_specs=pl.BlockSpec((TB, P), lambda i: (i, 0)),
        compiler_params=pltpu.CompilerParams(
            dimension_semantics=("parallel",),
            vmem_limit_bytes=vmem_limit,
        ),
        cost_estimate=pl.CostEstimate(
            flops=2 * B * D * D + 2 * B * D * P,
            bytes_accessed=xb * (B * D + D * D + D * P) + 4 * B * P,
            transcendentals=0,
        ),
    )(x, W1, W2)

    return out[:, :output_num]


# ---------------------------------- main ----------------------------------- #

if __name__ == "__main__":
    key = jax.random.PRNGKey(0)
    kx, kt = jax.random.split(key)

    input_num = 16              # -> num_qubit = 4, state dim D = 16
    output_num = 10             # > num_qubit, <= 2**num_qubit (skips amp2prop)
    batch = 8
    n_qubits = int(math.log2(input_num))

    # Deterministic parameter init: theta ~ N(0,1) * pi (real part only; the
    # PyTorch cdouble parameter has zero imaginary part).
    theta = jnp.pi * jax.random.normal(kt, (2 * n_qubits,), dtype=jnp.float32)
    x = jax.random.normal(kx, (batch, input_num), dtype=jnp.float32)

    # Force the Pallas path so the kernel is actually exercised (the auto gate
    # would route this tiny shape to the fused XLA dot).
    out = vqc_net_forward(x, theta, output_num, force_pallas=True)
    out = jax.block_until_ready(out)

    # Sanity check against the dense-unitary reference (the math the PyTorch
    # module performs).
    U = build_vqc10_matrix(theta, n_qubits)
    ref = x @ U[:output_num, :].T
    assert out.shape == (batch, output_num)
    assert jnp.allclose(out, ref, atol=1e-5, rtol=1e-5)

    print("KERNEL_OK")
</pallas_src>

<mosaic_0001>
module attributes {stable_mosaic.version = 11 : i64} {
  func.func @_vqc_fwd_kernel(%arg0: i32, %arg1: memref<8x16xf32, #tpu.memory_space<vmem>>, %arg2: memref<16x16xf32, #tpu.memory_space<vmem>>, %arg3: memref<16x128xf32, #tpu.memory_space<vmem>>, %arg4: memref<8x128xf32, #tpu.memory_space<vmem>>) attributes {dimension_semantics = [#tpu.dimension_semantics<parallel>], iteration_bounds = array<i64: 1>, scalar_prefetch = 0 : i64, scratch_operands = 0 : i64, tpu.core_type = #tpu.core_type<tc>, window_params = [{transform_indices = @transform_0, window_bounds = array<i64: 8, 16>}, {pipeline_mode = #tpu.pipeline_mode<synchronous>, transform_indices = @transform_1, window_bounds = array<i64: 16, 16>}, {pipeline_mode = #tpu.pipeline_mode<synchronous>, transform_indices = @transform_2, window_bounds = array<i64: 16, 128>}, {transform_indices = @transform_3, window_bounds = array<i64: 8, 128>}]} {
    %c0 = arith.constant 0 : index
    %c0_0 = arith.constant 0 : index
    %0 = vector.load %arg1[%c0, %c0_0] : memref<8x16xf32, #tpu.memory_space<vmem>>, vector<8x16xf32>
    %c0_1 = arith.constant 0 : index
    %c0_2 = arith.constant 0 : index
    %1 = vector.load %arg2[%c0_1, %c0_2] : memref<16x16xf32, #tpu.memory_space<vmem>>, vector<16x16xf32>
    %cst = arith.constant dense<0.000000e+00> : vector<8x16xf32>
    %2 = tpu.matmul %0, %1, %cst {dimension_numbers = #tpu.dot_dimension_numbers<[1], [0], [0], [1], [0, 0, 1, 1], [], []>} : vector<8x16xf32>, vector<16x16xf32>, vector<8x16xf32> -> vector<8x16xf32>
    %c0_3 = arith.constant 0 : index
    %c0_4 = arith.constant 0 : index
    %3 = vector.load %arg3[%c0_3, %c0_4] : memref<16x128xf32, #tpu.memory_space<vmem>>, vector<16x128xf32>
    %cst_5 = arith.constant dense<0.000000e+00> : vector<8x128xf32>
    %4 = tpu.matmul %2, %3, %cst_5 {dimension_numbers = #tpu.dot_dimension_numbers<[1], [0], [0], [1], [0, 0, 1, 1], [], []>} : vector<8x16xf32>, vector<16x128xf32>, vector<8x128xf32> -> vector<8x128xf32>
    %c0_6 = arith.constant 0 : index
    %c0_7 = arith.constant 0 : index
    %5 = vector.load %arg4[%c0_6, %c0_7] : memref<8x128xf32, #tpu.memory_space<vmem>>, vector<8x128xf32>
    tpu.vector_store %arg4[%c0_6, %c0_7], %4 {strides = array<i32>} : memref<8x128xf32, #tpu.memory_space<vmem>>, vector<8x128xf32>,
    return
  }
  func.func @transform_0(%arg0: i32) -> (i32, i32) {
    %c0_i32 = arith.constant 0 : i32
    %c0_i32_0 = arith.constant 0 : i32
    return %arg0, %c0_i32 : i32, i32
  }
  func.func @transform_1(%arg0: i32) -> (i32, i32) {
    %c0_i32 = arith.constant 0 : i32
    %c0_i32_0 = arith.constant 0 : i32
    %c0_i32_1 = arith.constant 0 : i32
    return %c0_i32, %c0_i32_0 : i32, i32
  }
  func.func @transform_2(%arg0: i32) -> (i32, i32) {
    %c0_i32 = arith.constant 0 : i32
    %c0_i32_0 = arith.constant 0 : i32
    %c0_i32_1 = arith.constant 0 : i32
    return %c0_i32, %c0_i32_0 : i32, i32
  }
  func.func @transform_3(%arg0: i32) -> (i32, i32) {
    %c0_i32 = arith.constant 0 : i32
    %c0_i32_0 = arith.constant 0 : i32
    return %arg0, %c0_i32 : i32, i32
  }
}

</mosaic_0001>

<bundles_post_ra>
// kernel: vqc_net_forward.1
= control target key start
LH: loop header
LB: loop body
LE: loop exit
PB: predicated region body
PF: predicated region fallthrough
CT: control target
= control target key end

     0   :  { %v238_v2 = vmov 0.0|0.0   ;;  %vm239_vm0 = vmmov 0   ;;  %v240_v4 = vmov 0.0   ;;  %s289_s0 = inlined_call_operand.vmem [shape: f32[8,16], index: 0, kind: input, shape index: {}]   ;;  %s290_s1 = inlined_call_operand.vmem [shape: f32[16,16], index: 1, kind: input, shape index: {}]   ;;  %s291_s2 = inlined_call_operand.vmem [shape: f32[16,128], index: 2, kind: input, shape index: {}]   ;;  %s292_s3 = inlined_call_operand.hbm [shape: f32[8,128], index: 3, kind: output, shape index: {}]  }
   0x1   :  { %v16_v0 = vld [vmem:[%s290_s1] sm:$0xff]  ;;  %v17_v1 = vld [vmem:[%s290_s1 + $0x8] sm:$0xff]  ;;  %204 = vmatprep.subr.bf16.mxu0 %v238_v2  ;;  %194 = vmatprep.mubr.msk.f32.mxu0 %vm239_vm0, %v240_v4 }
   0x2   :  { %v205_v3 = vpack.c.bf16 %v17_v1, %v16_v0  ;;  %v92_v5 = vld [vmem:[%s291_s2] sm:$0xff]  ;;  %v93_v6 = vld [vmem:[%s291_s2 + $0x8] sm:$0xff] }
   0x3   :  { %8 = vsyncpa [#allocation3], 0  ;;  %207 = vmatprep.subr.bf16.mxu1 %v238_v2  ;;  %v208_v7 = vpack.c.bf16 %v93_v6, %v92_v5  ;;  %201 = vmatprep.mubr.msk.f32.mxu1 %vm239_vm0, %v240_v4  ;;  %v15_v8 = vld [vmem:[%s289_s0] sm:$0xff]  ;;  %vm18_vm1 = vcmask 130048   ;;  %s241_s21 = smov [#allocation2]  }
   0x4   :  { %206 = vmatpush3.bf16.msra.mxu0 %v205_v3  ;;  %s174_s22 = sshll.u32 %s241_s21, 4  ;;  %s175_s22 = int_to_ptr.vmem [resolvable:$true] %s174_s22 }
   0x5   :  { %209 = vmatpush3.bf16.msra.mxu1 %v208_v7  ;;  %s214_s2 = scalar_lea.vmem %s175_s22, 128  ;;  %p219_p1 = scmp.lt.s32.totalorder %s175_s22, %s175_s22 }
   0x6   :  { %p215_p0 = scmp.ne.s32.totalorder %s175_s22, %s214_s2  ;;  %p220_p2 = scmp.lt.s32.totalorder %s214_s2, %s214_s2 }
   0x7   :  { %195 = vmatmul.mubr.msk.f32.vlgmr.msra.gmra.mrb[0].mxu0 %vm18_vm1, %v15_v8 }
   0x8   :  { %p221_p3 = por %p220_p2, %p219_p1 }
   0xa   :  { %p222_p4 = pnand %p221_p3, %p215_p0 }
  0xda   :  { %v88_v9 = vpop.f32.mrb[0].mxu0 }
  0xdb   :  { %v196_v10 = vpop.f32.mrb[1].mxu0  ;;  %202 = vmatmul.mubr.msk.f32.vlgmr.msra.gmra.mrb[0].mxu1 %vm18_vm1, %v88_v9 }
 0x1ae   :  { %v163_v11 = vpop.f32.mrb[0].mxu1 }
 0x1af   :  { %167 = vst [vmem:[#allocation2] sm:$0xff] %v163_v11  ;;  %v203_v12 = vpop.f32.mrb[1].mxu1 }
 0x1b0   :  { %225 = shalt.err (!%p222_p4)
}
 0x1b1   :  { %s226_s24 = scalar_lea.hbm %s292_s3, 128 }
 0x1b2   :  { %p227_p5 = scmp.ne.s32.totalorder %s292_s3, %s226_s24  ;;  %p230_p6 = scmp.lt.u32.totalorder %s226_s24, %s292_s3 }
 0x1b4   :  { %p232_p7 = pnand %p230_p6, %p227_p5 }
 0x1b6   :  { %235 = shalt.err (!%p232_p7)
}
 0x1b7   :  { %177 = dma.vmem_to_hbm [thread:$0]  %s175_s22, 128, %s292_s3, [#allocation3]  }
 0x1b8   :  { %236 = dma.done.wait [#allocation3], 128  }
 0x1b9   :  { %237 = vsyncadd [#allocation3], 4294967168 }
 0x1ba   :  { %181 = vsyncpa [#allocation3], 1 }

</bundles_post_ra>
